<compile_context>
chip_gen: v7x
topology: tpu7x:2x2x1
jax: 0.10.0
libtpu: 0.0.40
codegen_flags: <defaults>
</compile_context>

<pallas_src>
import functools

import jax
import jax.numpy as jnp
from jax.experimental import pallas as pl
from jax.experimental.pallas import tpu as pltpu


def _round_up(n, m):
    return ((n + m - 1) // m) * m


def _vmem_budget_bytes():
    """~3/4 of this chip's VMEM (falls back to a v7x-safe 48 MiB)."""
    try:
        cap = pltpu.get_tpu_info().vmem_capacity_bytes
    except Exception:
        cap = 64 * 1024 * 1024
    return max(32 * 1024 * 1024, (int(cap) * 3) // 4)


def _shared_group_linear_kernel(x_ref, w_stk_ref, w_read_ref, w_wrt_ref,
                                seg_sum_ref, o_ref):
    T = seg_sum_ref.shape[1]     # number of templates
    sp = o_ref.shape[1]          # lane-padded per-template output width

    x = x_ref[...]                                                         # (tn, din)

    # All templates in one lane-dense stacked matmul (f32 accumulation on MXU).
    h = jnp.dot(x, w_stk_ref[...], preferred_element_type=jnp.float32)     # (tn, T*sp)

    # Read projection and write projection (u[:, t*sp+d] = x_read . W_write[t,d,:]).
    x_read = jnp.dot(x, w_read_ref[...], preferred_element_type=jnp.float32)
    u = jnp.dot(x_read.astype(w_wrt_ref.dtype), w_wrt_ref[...],
                preferred_element_type=jnp.float32)                        # (tn, T*sp)

    # logits[:, t] = x_read . (h_t @ W_write[t]) == segment-sum of h*u.
    logits = jnp.dot(h * u, seg_sum_ref[...],
                     preferred_element_type=jnp.float32)                   # (tn, T)

    # Softmax over templates; the divide goes to the EUP reciprocal slot.
    m = jnp.max(logits, axis=1, keepdims=True)
    e = jnp.exp(logits - m)
    att = e * pl.reciprocal(jnp.sum(e, axis=1, keepdims=True), approx=True)  # (tn, T)

    # Fused attention broadcast + reduction over templates: T lane-aligned
    # slice FMAs (no seg_expand / seg_gather matmuls, no att_e intermediate).
    out = att[:, 0:1] * h[:, 0:sp]
    for t in range(1, T):
        out = out + att[:, t:t + 1] * h[:, t * sp:(t + 1) * sp]

    o_ref[...] = out.astype(o_ref.dtype)


def prepare_params(w_templates, w_read, w_write, *, use_bf16=False):
    """Pack module parameters ONCE (outside the jitted hot path).

    w_templates: (T, dout, din)   nn.Linear weights (y = x @ W.T), bias=False
    w_read:      (1, din, datt)   GroupLinearLayer(din, datt, 1) weight
    w_write:     (T, dout, datt)  GroupLinearLayer(dout, datt, T) weight
    use_bf16:    cast matmul operands to bf16 (f32 accumulation stays) — the
                 v6e/v7x MXU fast path; loosens tolerance to bf16 level.
    """
    T, dout, din = w_templates.shape
    datt = w_read.shape[-1]
    sp = _round_up(dout, 128)                    # lane-dense per-template segment
    wdt = jnp.bfloat16 if use_bf16 else jnp.float32

    # column t*sp+d of W_stacked is W_t[d, :]  ->  x @ W_stacked == concat_t(x @ W_t.T)
    w_stk = jnp.transpose(w_templates, (2, 0, 1))                # (din, T, dout)
    w_stk = jnp.pad(w_stk, ((0, 0), (0, 0), (0, sp - dout)))
    w_stacked = w_stk.reshape(din, T * sp).astype(wdt)

    w_read2 = w_read[0].astype(wdt)                              # (din, datt)

    # column t*sp+d of W_writeT is W_write[t, d, :]
    w_wrt = jnp.transpose(w_write, (2, 0, 1))                    # (datt, T, dout)
    w_wrt = jnp.pad(w_wrt, ((0, 0), (0, 0), (0, sp - dout)))
    w_writeT = w_wrt.reshape(datt, T * sp).astype(wdt)

    # segment-sum selector (tiny: T*sp x T); pad lanes of h*u are zero so the
    # extra ones contribute nothing.
    seg_sum = jnp.repeat(jnp.eye(T, dtype=jnp.float32), sp, axis=0)   # (T*sp, T)

    return (w_stacked, w_read2, w_writeT, seg_sum)


@functools.partial(jax.jit, static_argnames=("dout", "tile_n"))
def shared_group_linear(x, params, *, dout, tile_n=256):
    """x: (b, k, din); params: output of prepare_params(); dout: true output width."""
    w_stacked, w_read2, w_writeT, seg_sum = params
    b, k, din = x.shape
    TSP = w_stacked.shape[1]                  # T * sp
    T = seg_sum.shape[1]
    sp = TSP // T                             # lane-padded per-template width
    datt = w_read2.shape[1]
    cdt = w_stacked.dtype                     # matmul operand dtype (f32 or bf16)
    sub = 8 if cdt == jnp.float32 else 16     # sublane packing requirement

    N = b * k
    x2 = x.reshape(N, din).astype(cdt)        # cast at the pallas_call boundary

    # Row tile: multiple of the sublane pack; no wrapper-side padding (Pallas
    # masks the partial tail block when tn does not divide N).
    tn = max(sub, min(tile_n, _round_up(N, sub)))
    # v7x has 2 TensorCores: make sure the "parallel" row axis has >= 2 steps
    # when there are enough rows so both cores get work.
    if pl.cdiv(N, tn) < 2 and N > sub:
        tn = _round_up(pl.cdiv(N, 2), sub)
    grid = (pl.cdiv(N, tn),)

    # VMEM budget: weights single-buffered, x/out tiles double-buffered,
    # ~3 full-width f32 intermediates (h, u, out); 2x headroom, clamped to
    # ~3/4 of physical VMEM (48 MiB on v7x, 96 MiB on v5e/v6e).
    itm = jnp.dtype(cdt).itemsize
    weights_b = (w_stacked.size + w_read2.size + w_writeT.size) * itm + seg_sum.size * 4
    per_step = tn * din * itm + tn * sp * jnp.dtype(x.dtype).itemsize
    interm = 3 * tn * TSP * 4
    est = weights_b + 2 * per_step + interm
    vmem_limit = int(min(max(2 * est, 32 * 1024 * 1024), _vmem_budget_bytes()))

    out = pl.pallas_call(
        _shared_group_linear_kernel,
        out_shape=jax.ShapeDtypeStruct((N, sp), x.dtype),
        grid_spec=pltpu.PrefetchScalarGridSpec(
            num_scalar_prefetch=0,
            grid=grid,
            in_specs=[
                pl.BlockSpec((tn, din), lambda i: (i, 0)),                 # x row tile
                pl.BlockSpec((din, TSP), lambda i: (0, 0),
                             pipeline_mode=pl.Buffered(1)),                # stacked templates
                pl.BlockSpec((din, datt), lambda i: (0, 0),
                             pipeline_mode=pl.Buffered(1)),                # read projection
                pl.BlockSpec((datt, TSP), lambda i: (0, 0),
                             pipeline_mode=pl.Buffered(1)),                # write projection^T
                pl.BlockSpec((TSP, T), lambda i: (0, 0),
                             pipeline_mode=pl.Buffered(1)),                # segment-sum selector
            ],
            out_specs=pl.BlockSpec((tn, sp), lambda i: (i, 0)),            # lane-dense output
        ),
        compiler_params=pltpu.CompilerParams(
            dimension_semantics=("parallel",),
            vmem_limit_bytes=vmem_limit,
        ),
    )(x2, w_stacked, w_read2, w_writeT, seg_sum)

    return out[:, :dout].reshape(b, k, dout)


def _reference(x, w_templates, w_read, w_write):
    """Pure-JAX mirror of the PyTorch SharedGroupLinearLayer.forward."""
    b, k, din = x.shape
    T, dout, _ = w_templates.shape
    N = b * k
    x2 = x.reshape(N, din)
    x_read = (x2 @ w_read[0])[:, None, :]                               # (N, 1, datt)
    h = jnp.stack([x2 @ w_templates[t].T for t in range(T)], axis=1)    # (N, T, dout)
    x_write = jnp.einsum('ntd,tdf->ntf', h, w_write)                    # (N, T, datt)
    logits = jnp.einsum('nif,ntf->nit', x_read, x_write)                # (N, 1, T)
    att = jax.nn.softmax(logits, axis=2)
    out = jnp.einsum('nit,ntd->nid', att, h)                            # (N, 1, dout)
    return out.mean(axis=1).reshape(b, k, dout)


if __name__ == "__main__":
    b, k, din, dout, n_templates, datt = 2, 8, 32, 32, 4, 16

    key = jax.random.PRNGKey(0)
    kx, kw, kr, kv = jax.random.split(key, 4)

    x = jax.random.normal(kx, (b, k, din), dtype=jnp.float32)

    # nn.Linear(din, dout, bias=False) init: U(-1/sqrt(din), 1/sqrt(din))
    bound = 1.0 / (din ** 0.5)
    w_templates = jax.random.uniform(
        kw, (n_templates, dout, din), jnp.float32, minval=-bound, maxval=bound)
    # GroupLinearLayer init: 0.01 * randn(num_blocks, din, dout)
    w_read = 0.01 * jax.random.normal(kr, (1, din, datt), dtype=jnp.float32)
    w_write = 0.01 * jax.random.normal(kv, (n_templates, dout, datt), dtype=jnp.float32)

    ref = _reference(x, w_templates, w_read, w_write)

    # f32 operands (tolerance loosened slightly vs 1e-4 for the EUP approx reciprocal).
    params_f32 = prepare_params(w_templates, w_read, w_write, use_bf16=False)
    out_f32 = jax.block_until_ready(shared_group_linear(x, params_f32, dout=dout))
    assert out_f32.shape == (b, k, dout)
    assert jnp.allclose(out_f32, ref, atol=1e-3, rtol=1e-3), \
        float(jnp.max(jnp.abs(out_f32 - ref)))

    # bf16 matmul operands with f32 accumulation — the v6e/v7x MXU fast path.
    params_bf16 = prepare_params(w_templates, w_read, w_write, use_bf16=True)
    out_bf16 = jax.block_until_ready(shared_group_linear(x, params_bf16, dout=dout))
    assert out_bf16.shape == (b, k, dout)
    assert jnp.allclose(out_bf16, ref, atol=1e-1, rtol=1e-1), \
        float(jnp.max(jnp.abs(out_bf16 - ref)))

    print("KERNEL_OK")
</pallas_src>

<mosaic_0001>
module attributes {stable_mosaic.version = 11 : i64} {
  func.func @_shared_group_linear_kernel(%arg0: i32, %arg1: memref<8x32xf32, #tpu.memory_space<vmem>>, %arg2: memref<32x512xf32, #tpu.memory_space<vmem>>, %arg3: memref<32x16xf32, #tpu.memory_space<vmem>>, %arg4: memref<16x512xf32, #tpu.memory_space<vmem>>, %arg5: memref<512x4xf32, #tpu.memory_space<vmem>>, %arg6: memref<8x128xf32, #tpu.memory_space<vmem>>) attributes {dimension_semantics = [#tpu.dimension_semantics<parallel>], iteration_bounds = array<i64: 2>, scalar_prefetch = 0 : i64, scratch_operands = 0 : i64, tpu.core_type = #tpu.core_type<tc>, window_params = [{transform_indices = @transform_0, window_bounds = array<i64: 8, 32>}, {pipeline_mode = #tpu.pipeline_mode<synchronous>, transform_indices = @transform_1, window_bounds = array<i64: 32, 512>}, {pipeline_mode = #tpu.pipeline_mode<synchronous>, transform_indices = @transform_2, window_bounds = array<i64: 32, 16>}, {pipeline_mode = #tpu.pipeline_mode<synchronous>, transform_indices = @transform_3, window_bounds = array<i64: 16, 512>}, {pipeline_mode = #tpu.pipeline_mode<synchronous>, transform_indices = @transform_4, window_bounds = array<i64: 512, 4>}, {transform_indices = @transform_5, window_bounds = array<i64: 8, 128>}]} {
    %c0 = arith.constant 0 : index
    %c0_0 = arith.constant 0 : index
    %0 = vector.load %arg1[%c0, %c0_0] : memref<8x32xf32, #tpu.memory_space<vmem>>, vector<8x32xf32>
    %c0_1 = arith.constant 0 : index
    %c0_2 = arith.constant 0 : index
    %1 = vector.load %arg2[%c0_1, %c0_2] : memref<32x512xf32, #tpu.memory_space<vmem>>, vector<32x512xf32>
    %cst = arith.constant dense<0.000000e+00> : vector<8x512xf32>
    %2 = tpu.matmul %0, %1, %cst {dimension_numbers = #tpu.dot_dimension_numbers<[1], [0], [0], [1], [0, 0, 1, 1], [], []>} : vector<8x32xf32>, vector<32x512xf32>, vector<8x512xf32> -> vector<8x512xf32>
    %c0_3 = arith.constant 0 : index
    %c0_4 = arith.constant 0 : index
    %3 = vector.load %arg3[%c0_3, %c0_4] : memref<32x16xf32, #tpu.memory_space<vmem>>, vector<32x16xf32>
    %cst_5 = arith.constant dense<0.000000e+00> : vector<8x16xf32>
    %4 = tpu.matmul %0, %3, %cst_5 {dimension_numbers = #tpu.dot_dimension_numbers<[1], [0], [0], [1], [0, 0, 1, 1], [], []>} : vector<8x32xf32>, vector<32x16xf32>, vector<8x16xf32> -> vector<8x16xf32>
    %c0_6 = arith.constant 0 : index
    %c0_7 = arith.constant 0 : index
    %5 = vector.load %arg4[%c0_6, %c0_7] : memref<16x512xf32, #tpu.memory_space<vmem>>, vector<16x512xf32>
    %cst_8 = arith.constant dense<0.000000e+00> : vector<8x512xf32>
    %6 = tpu.matmul %4, %5, %cst_8 {dimension_numbers = #tpu.dot_dimension_numbers<[1], [0], [0], [1], [0, 0, 1, 1], [], []>} : vector<8x16xf32>, vector<16x512xf32>, vector<8x512xf32> -> vector<8x512xf32>
    %7 = arith.mulf %2, %6 : vector<8x512xf32>
    %c0_9 = arith.constant 0 : index
    %c0_10 = arith.constant 0 : index
    %8 = vector.load %arg5[%c0_9, %c0_10] : memref<512x4xf32, #tpu.memory_space<vmem>>, vector<512x4xf32>
    %cst_11 = arith.constant dense<0.000000e+00> : vector<8x4xf32>
    %9 = tpu.matmul %7, %8, %cst_11 {dimension_numbers = #tpu.dot_dimension_numbers<[1], [0], [0], [1], [0, 0, 1, 1], [], []>} : vector<8x512xf32>, vector<512x4xf32>, vector<8x4xf32> -> vector<8x4xf32>
    %cst_12 = arith.constant dense<0xFF800000> : vector<8xf32>
    %10 = vector.multi_reduction <maximumf>, %9, %cst_12 [1] : vector<8x4xf32> to vector<8xf32>
    %11 = vector.shape_cast %10 : vector<8xf32> to vector<8x1xf32>
    %12 = vector.broadcast %11 : vector<8x1xf32> to vector<8x4xf32>
    %13 = arith.subf %9, %12 : vector<8x4xf32>
    %14 = math.exp %13 : vector<8x4xf32>
    %cst_13 = arith.constant dense<0.000000e+00> : vector<8xf32>
    %15 = vector.multi_reduction <add>, %14, %cst_13 [1] : vector<8x4xf32> to vector<8xf32>
    %16 = vector.shape_cast %15 : vector<8xf32> to vector<8x1xf32>
    %17 = tpu.reciprocal %16 {approx = true} : vector<8x1xf32> -> vector<8x1xf32>
    %18 = vector.broadcast %17 : vector<8x1xf32> to vector<8x4xf32>
    %19 = arith.mulf %14, %18 : vector<8x4xf32>
    %20 = vector.extract_strided_slice %19 {offsets = [0, 0], sizes = [8, 1], strides = [1, 1]} : vector<8x4xf32> to vector<8x1xf32>
    %21 = vector.extract_strided_slice %2 {offsets = [0, 0], sizes = [8, 128], strides = [1, 1]} : vector<8x512xf32> to vector<8x128xf32>
    %22 = vector.broadcast %20 : vector<8x1xf32> to vector<8x128xf32>
    %23 = arith.mulf %22, %21 : vector<8x128xf32>
    %24 = vector.extract_strided_slice %19 {offsets = [0, 1], sizes = [8, 1], strides = [1, 1]} : vector<8x4xf32> to vector<8x1xf32>
    %25 = vector.extract_strided_slice %2 {offsets = [0, 128], sizes = [8, 128], strides = [1, 1]} : vector<8x512xf32> to vector<8x128xf32>
    %26 = vector.broadcast %24 : vector<8x1xf32> to vector<8x128xf32>
    %27 = arith.mulf %26, %25 : vector<8x128xf32>
    %28 = arith.addf %23, %27 : vector<8x128xf32>
    %29 = vector.extract_strided_slice %19 {offsets = [0, 2], sizes = [8, 1], strides = [1, 1]} : vector<8x4xf32> to vector<8x1xf32>
    %30 = vector.extract_strided_slice %2 {offsets = [0, 256], sizes = [8, 128], strides = [1, 1]} : vector<8x512xf32> to vector<8x128xf32>
    %31 = vector.broadcast %29 : vector<8x1xf32> to vector<8x128xf32>
    %32 = arith.mulf %31, %30 : vector<8x128xf32>
    %33 = arith.addf %28, %32 : vector<8x128xf32>
    %34 = vector.extract_strided_slice %19 {offsets = [0, 3], sizes = [8, 1], strides = [1, 1]} : vector<8x4xf32> to vector<8x1xf32>
    %35 = vector.extract_strided_slice %2 {offsets = [0, 384], sizes = [8, 128], strides = [1, 1]} : vector<8x512xf32> to vector<8x128xf32>
    %36 = vector.broadcast %34 : vector<8x1xf32> to vector<8x128xf32>
    %37 = arith.mulf %36, %35 : vector<8x128xf32>
    %38 = arith.addf %33, %37 : vector<8x128xf32>
    %c0_14 = arith.constant 0 : index
    %c0_15 = arith.constant 0 : index
    %39 = vector.load %arg6[%c0_14, %c0_15] : memref<8x128xf32, #tpu.memory_space<vmem>>, vector<8x128xf32>
    tpu.vector_store %arg6[%c0_14, %c0_15], %38 {strides = array<i32>} : memref<8x128xf32, #tpu.memory_space<vmem>>, vector<8x128xf32>,
    return
  }
  func.func @transform_0(%arg0: i32) -> (i32, i32) {
    %c0_i32 = arith.constant 0 : i32
    %c0_i32_0 = arith.constant 0 : i32
    return %arg0, %c0_i32 : i32, i32
  }
  func.func @transform_1(%arg0: i32) -> (i32, i32) {
    %c0_i32 = arith.constant 0 : i32
    %c0_i32_0 = arith.constant 0 : i32
    %c0_i32_1 = arith.constant 0 : i32
    return %c0_i32, %c0_i32_0 : i32, i32
  }
  func.func @transform_2(%arg0: i32) -> (i32, i32) {
    %c0_i32 = arith.constant 0 : i32
    %c0_i32_0 = arith.constant 0 : i32
    %c0_i32_1 = arith.constant 0 : i32
    return %c0_i32, %c0_i32_0 : i32, i32
  }
  func.func @transform_3(%arg0: i32) -> (i32, i32) {
    %c0_i32 = arith.constant 0 : i32
    %c0_i32_0 = arith.constant 0 : i32
    %c0_i32_1 = arith.constant 0 : i32
    return %c0_i32, %c0_i32_0 : i32, i32
  }
  func.func @transform_4(%arg0: i32) -> (i32, i32) {
    %c0_i32 = arith.constant 0 : i32
    %c0_i32_0 = arith.constant 0 : i32
    %c0_i32_1 = arith.constant 0 : i32
    return %c0_i32, %c0_i32_0 : i32, i32
  }
  func.func @transform_5(%arg0: i32) -> (i32, i32) {
    %c0_i32 = arith.constant 0 : i32
    %c0_i32_0 = arith.constant 0 : i32
    return %arg0, %c0_i32 : i32, i32
  }
}

</mosaic_0001>

<bundles_post_ra>
// kernel: shared_group_linear.1
= control target key start
LH: loop header
LB: loop body
LE: loop exit
PB: predicated region body
PF: predicated region fallthrough
CT: control target
= control target key end

     0   :  { %s1172_s18 = smov 0   ;;  %s1498_s0 = inlined_call_operand.vmem [shape: f32[16,32], index: 0, kind: input, shape index: {}]   ;;  %s1499_s1 = inlined_call_operand.vmem [shape: f32[32,512], index: 1, kind: input, shape index: {}]   ;;  %s1500_s2 = inlined_call_operand.vmem [shape: f32[32,16], index: 2, kind: input, shape index: {}]   ;;  %s1501_s3 = inlined_call_operand.vmem [shape: f32[16,512], index: 3, kind: input, shape index: {}]   ;;  %s1502_s4 = inlined_call_operand.vmem [shape: f32[512,4], index: 4, kind: input, shape index: {}]   ;;  %s1503_s5 = inlined_call_operand.vmem [shape: f32[16,128], index: 5, kind: output, shape index: {}]  }
   0x1 LB: > { %s909_s19 = sadd.s32 4294967295, %s1133_s18   ;;  %p913_p0 = scmp.ge.s32.totalorder %s1133_s18, 1  ;;  %s1133_s18 = sphi %s1172_s18, %s15_s18  }
   0x2   : > { %p186_p1 = scmp.lt.s32.totalorder %s1133_s18, 3 }
   0x4   : > { %p187_p2 = pnand %p913_p0, %p186_p1 }
   0x5   : > { %v222_v0 = vld [vmem:[%s1499_s1 + $0x8] sm:$0xff] (!%p187_p2)  ;;  %v221_v2 = vld [vmem:[%s1499_s1] sm:$0xff] (!%p187_p2)  ;;  %p212_p3 = scmp.lt.s32.totalorder (!%p187_p2), %s909_s19, 1  ;;  %v1135_v7 = vmov (!%p187_p2), 0.0   ;;  %v224_v13 = vld [vmem:[%s1499_s1 + $0x18] sm:$0xff] (!%p187_p2)  ;;  %vm237_vm0 = vcmask (!%p187_p2), 261120  }
   0x6   : > { %190 = sbr.rel (%p187_p2) target bundleno = 1131 (0x46b), region = 40  ;;  %v226_v1 = vld [vmem:[%s1499_s1 + $0x28] sm:$0xff] (!%p187_p2)  ;;  %v225_v4 = vld [vmem:[%s1499_s1 + $0x20] sm:$0xff] (!%p187_p2)  ;;  %305 = vmatprep.mubr.f32.mxu0 (!%p187_p2), %v1135_v7  ;;  %376 = vmatprep.mubr.f32.mxu1 (!%p187_p2), %v1135_v7  ;;  %v228_v14 = vld [vmem:[%s1499_s1 + $0x38] sm:$0xff] (!%p187_p2)  ;;  %v1136_v23 = vmov (!%p187_p2), 0.0|0.0   ;;  %vm1137_vm1 = vmmov (!%p187_p2), 0  }
   0x7   : > { %v1009_v3 = vpack.c.bf16 (!%p187_p2), %v226_v1, %v222_v0  ;;  %v230_v5 = vld [vmem:[%s1499_s1 + $0x48] sm:$0xff] (!%p187_p2)  ;;  %v1011_v8 = vpack.c.bf16 (!%p187_p2), %v225_v4, %v221_v2  ;;  %v229_v10 = vld [vmem:[%s1499_s1 + $0x40] sm:$0xff] (!%p187_p2)  ;;  %v223_v15 = vld [vmem:[%s1499_s1 + $0x10] sm:$0xff] (!%p187_p2)  ;;  %v1017_v18 = vpack.c.bf16 (!%p187_p2), %v228_v14, %v224_v13  ;;  %vm465_vm2 = vcmask (!%p187_p2), 130048  }
   0x8   : > { %v234_v6 = vld [vmem:[%s1499_s1 + $0x68] sm:$0xff] (!%p187_p2)  ;;  %v233_v11 = vld [vmem:[%s1499_s1 + $0x60] sm:$0xff] (!%p187_p2)  ;;  %v227_v19 = vld [vmem:[%s1499_s1 + $0x30] sm:$0xff] (!%p187_p2)  ;;  %vm819_vm3 = vcmask (!%p187_p2), 31744  }
   0x9   : > { %v1013_v9 = vpack.c.bf16 (!%p187_p2), %v234_v6, %v230_v5  ;;  %1010 = vmatprep.subr.bf16.mxu0 (!%p187_p2), %v1009_v3  ;;  %v1015_v12 = vpack.c.bf16 (!%p187_p2), %v233_v11, %v229_v10  ;;  %v383_v16 = vld [vmem:[%s1500_s2] sm:$0xff] (!%p187_p2)  ;;  %v384_v17 = vld [vmem:[%s1500_s2 + $0x8] sm:$0xff] (!%p187_p2)  ;;  %v1019_v20 = vpack.c.bf16 (!%p187_p2), %v227_v19, %v223_v15  ;;  %1018 = vmatprep.subr.bf16.mxu1 (!%p187_p2), %v1017_v18  ;;  %v385_v24 = vld [vmem:[%s1500_s2 + $0x10] sm:$0xff] (!%p187_p2) }
   0xa   : > { %1012 = vmatpush1.bf16.msra.mxu0 (!%p187_p2), %v1011_v8  ;;  %v1026_v22 = vpack.c.bf16 (!%p187_p2), %v384_v17, %v383_v16  ;;  %v386_v25 = vld [vmem:[%s1500_s2 + $0x18] sm:$0xff] (!%p187_p2)  ;;  %v231_v30 = vld [vmem:[%s1499_s1 + $0x50] sm:$0xff] (!%p187_p2)  ;;  %v458_v33 = vld [vmem:[%s1501_s3 + $0x8] sm:$0xff] (!%p187_p2) }
   0xb   : > { %1014 = vmatprep.subr.bf16.mxu0 (!%p187_p2), %v1013_v9  ;;  %1020 = vmatpush1.bf16.msra.mxu1 (!%p187_p2), %v1019_v20  ;;  %v1029_v26 = vpack.c.bf16 (!%p187_p2), %v386_v25, %v385_v24  ;;  %v232_v27 = vld [vmem:[%s1499_s1 + $0x58] sm:$0xff] (!%p187_p2)  ;;  %v235_v31 = vld [vmem:[%s1499_s1 + $0x70] sm:$0xff] (!%p187_p2)  ;;  %v462_v34 = vld [vmem:[%s1501_s3 + $0x28] sm:$0xff] (!%p187_p2) }
   0xc   : > { %v236_v28 = vld [vmem:[%s1499_s1 + $0x78] sm:$0xff] (!%p187_p2)  ;;  %v1023_v32 = vpack.c.bf16 (!%p187_p2), %v235_v31, %v231_v30  ;;  %v457_v35 = vld [vmem:[%s1501_s3] sm:$0xff] (!%p187_p2)  ;;  %v1031_v36 = vpack.c.bf16 (!%p187_p2), %v462_v34, %v458_v33  ;;  %v632_v43 = vld [vmem:[%s1502_s4 + $0x88] sm:$0xff] (!%p187_p2) }
   0xd   : > { %s1505_s19 = smov (!%p212_p3, %s909_s19), 1  ;;  %v1021_v29 = vpack.c.bf16 %v236_v28, %v232_v27  ;;  %v461_v37 = vld [vmem:[%s1501_s3 + $0x20] sm:$0xff]  ;;  %v460_v39 = vld [vmem:[%s1501_s3 + $0x18] sm:$0xff]  ;;  %v616_v46 = vld [vmem:[%s1502_s4 + $0x8] sm:$0xff] }
   0xe   : > { %s914_s11 = sshll.u32 %s1505_s19, 3  ;;  %1016 = vmatpush1.bf16.msra.mxu0 %v1015_v12  ;;  %v1033_v38 = vpack.c.bf16 %v461_v37, %v457_v35  ;;  %v464_v40 = vld [vmem:[%s1501_s3 + $0x38] sm:$0xff]  ;;  %v631_v42 = vld [vmem:[%s1502_s4 + $0x80] sm:$0xff]  ;;  %v633_v47 = vld [vmem:[%s1502_s4 + $0x90] sm:$0xff] }
   0xf   : > { %s215_s22 = scalar_lea.vmem %s1498_s0, %s914_s11  ;;  %1025 = vmatprep.subr.bf16.mxu0 %v1136_v23  ;;  %1022 = vmatprep.subr.bf16.mxu1 %v1021_v29  ;;  %v1035_v41 = vpack.c.bf16 %v464_v40, %v460_v39  ;;  %v615_v44 = vld [vmem:[%s1502_s4] sm:$0xff]  ;;  %v1039_v45 = vpack.c.bf16 %v632_v43, %v631_v42  ;;  %v634_v48 = vld [vmem:[%s1502_s4 + $0x98] sm:$0xff]  ;;  %v617_v51 = vld [vmem:[%s1502_s4 + $0x10] sm:$0xff]  ;;  %s219_s8 = scalar_lea.vmem %s1503_s5, %s914_s11 }
  0x10   : > { %v220_v21 = vld [vmem:[%s215_s22] sm:$0xff]  ;;  %1024 = vmatpush1.bf16.msra.mxu1 %v1023_v32  ;;  %v1041_v49 = vpack.c.bf16 %v616_v46, %v615_v44  ;;  %v1043_v50 = vpack.c.bf16 %v634_v48, %v633_v47  ;;  %v618_v52 = vld [vmem:[%s1502_s4 + $0x18] sm:$0xff]  ;;  %v636_v55 = vld [vmem:[%s1502_s4 + $0xa8] sm:$0xff] }
  0x11   : > { %916 = vmatmul.mubr.msk.f32.vlgmr.msra.gmra.mrb[0].mxu0 %vm237_vm0, %v220_v21  ;;  %1032 = vmatprep.subr.bf16.mxu1 %v1031_v36  ;;  %v1045_v53 = vpack.c.bf16 %v618_v52, %v617_v51  ;;  %v635_v54 = vld [vmem:[%s1502_s4 + $0xa0] sm:$0xff]  ;;  %v620_v58 = vld [vmem:[%s1502_s4 + $0x28] sm:$0xff]  ;;  %v637_v59 = vld [vmem:[%s1502_s4 + $0xb0] sm:$0xff] }
  0x12   : > { %1027 = vmatpush3.bf16.msra.mxu0 %v1026_v22  ;;  %1006 = vmatprep.mubr.msk.f32.mxu0 %vm1137_vm1, %v1135_v7  ;;  %v1047_v56 = vpack.c.bf16 %v636_v55, %v635_v54  ;;  %v619_v57 = vld [vmem:[%s1502_s4 + $0x20] sm:$0xff]  ;;  %v638_v60 = vld [vmem:[%s1502_s4 + $0xb8] sm:$0xff]  ;;  %v621_v63 = vld [vmem:[%s1502_s4 + $0x30] sm:$0xff] }
  0x13   : > { %1028 = vmatprep.subr.bf16.mxu0 %v1136_v23  ;;  %917 = vmatmul.mubr.msk.f32.vlgmr.msra.gmra.mrb[0].mxu1 %vm237_vm0, %v220_v21  ;;  %v1049_v61 = vpack.c.bf16 %v620_v58, %v619_v57  ;;  %v1051_v62 = vpack.c.bf16 %v638_v60, %v637_v59  ;;  %v622_v0 = vld [vmem:[%s1502_s4 + $0x38] sm:$0xff]  ;;  %v639_v1 = vld [vmem:[%s1502_s4 + $0xc0] sm:$0xff]  ;;  %v640_v2 = vld [vmem:[%s1502_s4 + $0xc8] sm:$0xff] }
  0x14   : > { %1034 = vmatpush1.bf16.msra.mxu1 %v1033_v38  ;;  %533 = vmatprep.mubr.f32.mxu1 %v1135_v7  ;;  %v1053_v3 = vpack.c.bf16 %v622_v0, %v621_v63  ;;  %v1055_v4 = vpack.c.bf16 %v640_v2, %v639_v1  ;;  %v623_v5 = vld [vmem:[%s1502_s4 + $0x40] sm:$0xff]  ;;  %v624_v6 = vld [vmem:[%s1502_s4 + $0x48] sm:$0xff]  ;;  %v641_v8 = vld [vmem:[%s1502_s4 + $0xd0] sm:$0xff] }
  0x15   : > { %1036 = vmatprep.subr.bf16.mxu1 %v1035_v41  ;;  %v642_v9 = vld [vmem:[%s1502_s4 + $0xd8] sm:$0xff]  ;;  %v1057_v10 = vpack.c.bf16 %v624_v6, %v623_v5  ;;  %v625_v12 = vld [vmem:[%s1502_s4 + $0x50] sm:$0xff]  ;;  %v643_v15 = vld [vmem:[%s1502_s4 + $0xe0] sm:$0xff] }
  0x16   : > { %1030 = vmatpush3.bf16.msra.mxu0 %v1029_v26  ;;  %v1059_v11 = vpack.c.bf16 %v642_v9, %v641_v8  ;;  %v626_v13 = vld [vmem:[%s1502_s4 + $0x58] sm:$0xff]  ;;  %v644_v16 = vld [vmem:[%s1502_s4 + $0xe8] sm:$0xff]  ;;  %v627_v18 = vld [vmem:[%s1502_s4 + $0x60] sm:$0xff] }
  0x17   : > { %1040 = vmatprep.subr.bf16.mxu0 %v1039_v45  ;;  %v1061_v14 = vpack.c.bf16 %v626_v13, %v625_v12  ;;  %v1063_v17 = vpack.c.bf16 %v644_v16, %v643_v15  ;;  %v628_v19 = vld [vmem:[%s1502_s4 + $0x68] sm:$0xff]  ;;  %v459_v23 = vld [vmem:[%s1501_s3 + $0x10] sm:$0xff]  ;;  %v663_v25 = vld [vmem:[%s1502_s4 + $0x180] sm:$0xff] }
  0x18   : > { %v1065_v20 = vpack.c.bf16 %v628_v19, %v627_v18  ;;  %v463_v24 = vld [vmem:[%s1501_s3 + $0x30] sm:$0xff]  ;;  %v664_v26 = vld [vmem:[%s1502_s4 + $0x188] sm:$0xff]  ;;  %v647_v29 = vld [vmem:[%s1502_s4 + $0x100] sm:$0xff] }
  0x19   : > { %1007 = vmatmul.mubr.msk.f32.vlgmr.msra.gmra.mrb[2].mxu0 %vm237_vm0, %v220_v21  ;;  %v1037_v27 = vpack.c.bf16 %v463_v24, %v459_v23  ;;  %v1071_v28 = vpack.c.bf16 %v664_v26, %v663_v25  ;;  %v648_v30 = vld [vmem:[%s1502_s4 + $0x108] sm:$0xff]  ;;  %v665_v32 = vld [vmem:[%s1502_s4 + $0x190] sm:$0xff]  ;;  %v666_v33 = vld [vmem:[%s1502_s4 + $0x198] sm:$0xff] }
  0x1a   : > { %1042 = vmatpush3.bf16.msra.mxu0 %v1041_v49  ;;  %v1073_v35 = vpack.c.bf16 %v648_v30, %v647_v29  ;;  %v1075_v36 = vpack.c.bf16 %v666_v33, %v665_v32  ;;  %v649_v37 = vld [vmem:[%s1502_s4 + $0x110] sm:$0xff]  ;;  %v650_v38 = vld [vmem:[%s1502_s4 + $0x118] sm:$0xff]  ;;  %v667_v39 = vld [vmem:[%s1502_s4 + $0x1a0] sm:$0xff] }
  0x1b   : > { %1044 = vmatprep.subr.bf16.mxu0 %v1043_v50  ;;  %v668_v40 = vld [vmem:[%s1502_s4 + $0x1a8] sm:$0xff]  ;;  %v651_v42 = vld [vmem:[%s1502_s4 + $0x120] sm:$0xff]  ;;  %v669_v44 = vld [vmem:[%s1502_s4 + $0x1b0] sm:$0xff] }
  0x1c   : > { %v1079_v41 = vpack.c.bf16 %v668_v40, %v667_v39  ;;  %v652_v43 = vld [vmem:[%s1502_s4 + $0x128] sm:$0xff]  ;;  %v670_v45 = vld [vmem:[%s1502_s4 + $0x1b8] sm:$0xff]  ;;  %v653_v48 = vld [vmem:[%s1502_s4 + $0x130] sm:$0xff] }
  0x1d   : > { %v1081_v46 = vpack.c.bf16 %v652_v43, %v651_v42  ;;  %v1083_v47 = vpack.c.bf16 %v670_v45, %v669_v44  ;;  %v654_v49 = vld [vmem:[%s1502_s4 + $0x138] sm:$0xff]  ;;  %v671_v50 = vld [vmem:[%s1502_s4 + $0x1c0] sm:$0xff]  ;;  %v672_v51 = vld [vmem:[%s1502_s4 + $0x1c8] sm:$0xff]  ;;  %v1138_v42 = vmov 2   ;;  %v1139_v43 = vmov 0  }
  0x1e   : > { %1046 = vmatpush3.bf16.msra.mxu0 %v1045_v53  ;;  %v1085_v52 = vpack.c.bf16 %v654_v49, %v653_v48  ;;  %v1087_v53 = vpack.c.bf16 %v672_v51, %v671_v50  ;;  %v655_v54 = vld [vmem:[%s1502_s4 + $0x140] sm:$0xff]  ;;  %v656_v55 = vld [vmem:[%s1502_s4 + $0x148] sm:$0xff]  ;;  %v674_v57 = vld [vmem:[%s1502_s4 + $0x1d8] sm:$0xff]  ;;  %1120 = vset.pattern.permute.xlu0 %v1138_v42  ;;  %v1141_v48 = vmov 3  }
  0x1f   : > { %1048 = vmatprep.subr.bf16.mxu0 %v1047_v56  ;;  %v673_v56 = vld [vmem:[%s1502_s4 + $0x1d0] sm:$0xff]  ;;  %v1089_v58 = vpack.c.bf16 %v656_v55, %v655_v54  ;;  %v646_v2 = vld [vmem:[%s1502_s4 + $0xf8] sm:$0xff]  ;;  %v676_v5 = vld [vmem:[%s1502_s4 + $0x1e8] sm:$0xff]  ;;  %1118 = vset.pattern.permute.xlu1 %v1139_v43 }
  0x20   : > { %v1091_v59 = vpack.c.bf16 %v674_v57, %v673_v56  ;;  %v657_v60 = vld [vmem:[%s1502_s4 + $0x150] sm:$0xff]  ;;  %v630_v8 = vld [vmem:[%s1502_s4 + $0x78] sm:$0xff]  ;;  %v660_v12 = vld [vmem:[%s1502_s4 + $0x168] sm:$0xff] }
  0x21   : > { %v645_v1 = vld [vmem:[%s1502_s4 + $0xf0] sm:$0xff]  ;;  %v678_v15 = vld [vmem:[%s1502_s4 + $0x1f8] sm:$0xff] }
  0x22   : > { %1050 = vmatpush3.bf16.msra.mxu0 %v1049_v61  ;;  %v658_v61 = vld [vmem:[%s1502_s4 + $0x158] sm:$0xff]  ;;  %v629_v6 = vld [vmem:[%s1502_s4 + $0x70] sm:$0xff] }
  0x23   : > { %1052 = vmatprep.subr.bf16.mxu0 %v1051_v62  ;;  %v1093_v62 = vpack.c.bf16 %v658_v61, %v657_v60  ;;  %v662_v18 = vld [vmem:[%s1502_s4 + $0x178] sm:$0xff] }
  0x26   : > { %1054 = vmatpush3.bf16.msra.mxu0 %v1053_v3  ;;  %v675_v3 = vld [vmem:[%s1502_s4 + $0x1e0] sm:$0xff] }
  0x27   : > { %1056 = vmatprep.subr.bf16.mxu0 %v1055_v4  ;;  %v1067_v4 = vpack.c.bf16 %v646_v2, %v645_v1  ;;  %v1095_v9 = vpack.c.bf16 %v676_v5, %v675_v3 }
  0x2a   : > { %1058 = vmatpush3.bf16.msra.mxu0 %v1057_v10  ;;  %v1069_v10 = vpack.c.bf16 %v630_v8, %v629_v6 }
  0x2b   : > { %1060 = vmatprep.subr.bf16.mxu0 %v1059_v11  ;;  %v659_v11 = vld [vmem:[%s1502_s4 + $0x160] sm:$0xff] }
  0x2c   : > { %v1097_v13 = vpack.c.bf16 %v660_v12, %v659_v11 }
  0x2e   : > { %1062 = vmatpush3.bf16.msra.mxu0 %v1061_v14  ;;  %v677_v14 = vld [vmem:[%s1502_s4 + $0x1f0] sm:$0xff] }
  0x2f   : > { %1064 = vmatprep.subr.bf16.mxu0 %v1063_v17  ;;  %v1099_v16 = vpack.c.bf16 %v678_v15, %v677_v14  ;;  %v661_v17 = vld [vmem:[%s1502_s4 + $0x170] sm:$0xff] }
  0x30   : > { %v1101_v19 = vpack.c.bf16 %v662_v18, %v661_v17 }
  0x32   : > { %1066 = vmatpush3.bf16.msra.mxu0 %v1065_v20 }
  0x33   : > { %1068 = vmatprep.subr.bf16.mxu0 %v1067_v4 }
  0x36   : > { %1070 = vmatpush3.bf16.msra.mxu0 %v1069_v10 }
  0xe4   : > { %v1357_v21 = vpop.f32.mrb[0].mxu0 }
  0xe5   : > { %v1359_v22 = vpop.f32.mrb[1].mxu0 }
  0xe6   : > { %v1442_v63 = vpop.f32.mrb[0].mxu1 }
  0xe7   : > { %v1444_v0 = vpop.f32.mrb[1].mxu1 }
  0xec   : > { %v453_v31 = vpop.f32.mrb[2].mxu0 }
  0xed   : > { %v1008_v34 = vpop.f32.mrb[3].mxu0  ;;  %919 = vmatmul.mubr.msk.f32.vlgmr.msra.gmra.mrb[2].mxu1 %vm465_vm2, %v453_v31 }
  0xee   : > { %1038 = vmatpush1.bf16.msra.mxu1 %v1037_v27  ;;  %604 = vmatprep.mubr.f32.mxu1 %v1135_v7  ;;  %v1077_v7 = vpack.c.bf16 %v650_v38, %v649_v37 }
  0xef   : > { %1072 = vmatprep.subr.bf16.mxu1 %v1071_v28 }
  0xf1   : > { %920 = vmatmul.mubr.msk.f32.vlgmr.msra.gmra.mrb[4].mxu1 %vm465_vm2, %v453_v31 }
  0xf2   : > { %1074 = vmatpush3.bf16.msra.mxu1 %v1073_v35 }
  0xf3   : > { %1076 = vmatprep.subr.bf16.mxu1 %v1075_v36 }
  0xf6   : > { %1078 = vmatpush3.bf16.msra.mxu1 %v1077_v7 }
  0xf7   : > { %1080 = vmatprep.subr.bf16.mxu1 %v1079_v41 }
  0xfa   : > { %1082 = vmatpush3.bf16.msra.mxu1 %v1081_v46 }
  0xfb   : > { %1084 = vmatprep.subr.bf16.mxu1 %v1083_v47  ;;  %v1140_v47 = vmov 1  }
  0xfe   : > { %1086 = vmatpush3.bf16.msra.mxu1 %v1085_v52 }
  0xff   : > { %1088 = vmatprep.subr.bf16.mxu1 %v1087_v53 }
 0x102   : > { %1090 = vmatpush3.bf16.msra.mxu1 %v1089_v58 }
 0x103   : > { %1092 = vmatprep.subr.bf16.mxu1 %v1091_v59 }
 0x106   : > { %1094 = vmatpush3.bf16.msra.mxu1 %v1093_v62 }
 0x107   : > { %1096 = vmatprep.subr.bf16.mxu1 %v1095_v9 }
 0x10a   : > { %1098 = vmatpush3.bf16.msra.mxu1 %v1097_v13 }
 0x10b   : > { %1100 = vmatprep.subr.bf16.mxu1 %v1099_v16 }
 0x10e   : > { %1102 = vmatpush3.bf16.msra.mxu1 %v1101_v19 }
 0x1c0   : > { %v535_v20 = vpop.f32.mrb[2].mxu1 }
 0x1c1   : > { %v611_v23 = vmul.f32 %v535_v20, %v1357_v21  ;;  %v537_v24 = vpop.f32.mrb[3].mxu1 }
 0x1c2   : > { %v612_v25 = vmul.f32 %v537_v24, %v1359_v22 }
 0x1c4   : > { %v606_v26 = vpop.f32.mrb[4].mxu1  ;;  %743 = vmatprep.mubr.f32.mxu0 %v612_v25 }
 0x1c5   : > { %v613_v27 = vmul.f32 %v606_v26, %v1442_v63  ;;  %v608_v28 = vpop.f32.mrb[5].mxu1  ;;  %744 = vmatmul.mubr.f32.vlgmr.msra.gmra.mrb[4].mxu0 %v611_v23 }
 0x1c6   : > { %v614_v29 = vmul.f32 %v608_v28, %v1444_v0 }
 0x1c8   : > { %813 = vmatprep.mubr.f32.mxu1 %v614_v29 }
 0x1c9   : > { %814 = vmatmul.mubr.f32.vlgmr.msra.gmra.mrb[6].mxu1 %v613_v27 }
 0x298   : > { %v960_v30 = vpop.f32.mrb[4].mxu0 }
 0x299   : > { %v961_v31 = vpop.f32.mrb[5].mxu0 }
 0x29a   : > { %v962_v32 = vadd.f32 %v961_v31, %v960_v30 }
 0x29c   : > { %v995_v33 = vpop.f32.mrb[6].mxu1 }
 0x29d   : > { %v996_v34 = vpop.f32.mrb[7].mxu1 }
 0x29e   : > { %v997_v35 = vadd.f32 %v996_v34, %v995_v33 }
 0x2a0   : > { %v816_v36 = vadd.f32 %v997_v35, %v962_v32 }
 0x2a2   : > { %v820_v37 = vsel %vm819_vm3, %v816_v36, -inf }
 0x2a3   : > { %821 = vmax.xlane.f32.xlu0 %v820_v37 }
 0x330   : > { %v822_v38 = vpop.xlane.xlu0 %821 }
 0x331   : > { %v823_v39 = vsub.f32 %v816_v36, %v822_v38 }
 0x333   : > { %v824_v40 = vmul.f32 1.442695, %v823_v39 }
 0x335   : > { %1123 = vpow2.f32 %v824_v40 }
 0x33f   : > { %v1124_v7 = vpop.eup %1123 }
 0x340   : > { %v826_v41 = vsel %vm819_vm3, %v1124_v7, 0.0 }
 0x341   : > { %827 = vadd.xlane.f32.xlu0 %v826_v41 }
 0x3ce   : > { %v828_v44 = vpop.xlane.xlu0 %827 }
 0x3cf   : > { %1125 = vrcp.f32 %v828_v44 }
 0x3d9   : > { %v1126_v45 = vpop.eup %1125 }
 0x3da   : > { %v830_v46 = vmul.f32 %v1126_v45, %v1124_v7 }
 0x3dc   : > { %844 = vperm.xlu0 %1120, %v830_v46   ;;  %833 = vperm.xlu1 %1118, %v830_v46  }
 0x3e0   : > { %1119 = vset.pattern.permute.xlu1 %v1140_v47  ;;  %1122 = vset.pattern.permute.xlu0 %v1141_v48 }
 0x3e1   : > { %838 = vperm.xlu1 %1119, %v830_v46  }
 0x3e5   : > { %1121 = vset.pattern.permute.xlu1 %v1141_v48 }
 0x3e6   : > { %850 = vperm.xlu1 %1121, %v830_v46  }
 0x45b   : > { %v834_v49 = vpop.permute.xlu1 %833  ;;  %v845_v50 = vpop.permute.xlu0 %844 }
 0x45c   : > { %v836_v52 = vmul.f32 %v834_v49, %v1357_v21  ;;  %v847_v54 = vmul.f32 %v845_v50, %v1442_v63 }
 0x460   : > { %v839_v51 = vpop.permute.xlu1 %838 }
 0x461   : > { %v841_v53 = vmul.f32 %v839_v51, %v1359_v22 }
 0x463   : > { %v842_v55 = vadd.f32 %v841_v53, %v836_v52 }
 0x465   : > { %v848_v56 = vadd.f32 %v847_v54, %v842_v55  ;;  %v851_v57 = vpop.permute.xlu1 %850 }
 0x466   : > { %v853_v58 = vmul.f32 %v851_v57, %v1444_v0 }
 0x468   : > { %v854_v59 = vadd.f32 %v853_v58, %v848_v56 }
 0x46a   : > { %855 = vst [vmem:[%s219_s8] sm:$0xff] %v854_v59 }
 0x46b PF: > { %s15_s18 = sadd.s32 1, %s1133_s18  }
 0x46c   : > { %p12_p4 = scmp.ge.s32.totalorder %s15_s18, 4  }
 0x46e   :  { %14 = sbr.rel (!%p12_p4) target bundleno = 1 (0x1), region = 70 }

</bundles_post_ra>
